<compile_context>
chip_gen: v7x
topology: tpu7x:2x2x1
jax: 0.10.0
libtpu: 0.0.40
codegen_flags: <defaults>
</compile_context>

<pallas_src>
import functools

import jax
import jax.numpy as jnp
from jax import lax
from jax.experimental import pallas as pl
from jax.experimental.pallas import tpu as pltpu


def _dice_sums_kernel(*refs, n_classes, apply_softmax, has_ignore, s_total,
                      tile_n):
    if has_ignore:
        x_ref, t_ref, ig_ref, out_ref = refs
    else:
        x_ref, t_ref, out_ref = refs
        ig_ref = None

    j = pl.program_id(1)

    # Output block index depends only on the batch axis, so out_ref is resident
    # across the whole lane-tile reduction: accumulate directly into it.
    @pl.when(j == 0)
    def _():
        out_ref[...] = jnp.zeros_like(out_ref)

    # Ragged-tail validity (replaces wrapper-side padding). Only the last tile
    # per batch can be partial; OOB lanes may hold garbage (incl. NaN), so mask
    # with a select, not a multiply.
    col = j * tile_n + lax.broadcasted_iota(jnp.int32, (1, tile_n), 1)
    valid = col < s_total                                  # (1, TN) bool

    x = x_ref[...].astype(jnp.float32)                     # (C, TN) scores
    x = jnp.where(valid, x, 0.0)

    if apply_softmax:                                      # torch.softmax(inputs, dim=1)
        xmax = jnp.max(x, axis=0, keepdims=True)
        ex = jnp.exp(x - xmax)
        # one reciprocal per lane (EUP) + C muls instead of C divides per lane.
        # (approx=True is an additional EUP speedup if looser tolerance is OK.)
        inv = pl.reciprocal(jnp.sum(ex, axis=0, keepdims=True))
        x = ex * inv

    mask = valid.astype(jnp.float32)                       # (1, TN)
    if ig_ref is not None:
        mask = jnp.where(ig_ref[...] != -1, mask, 0.0)     # drop ignore == -1

    # One-hot encoder (masked). Compare in the label's own type family so int
    # targets never round-trip through float equality.
    t = t_ref[...]
    if jnp.issubdtype(t.dtype, jnp.floating):
        t_cmp = t.astype(jnp.float32)
        cls = lax.broadcasted_iota(jnp.float32, (n_classes, 1), 0)
    else:
        t_cmp = t.astype(jnp.int32)
        cls = lax.broadcasted_iota(jnp.int32, (n_classes, 1), 0)
    onehot_m = jnp.where(t_cmp == cls, mask, 0.0)          # (C, TN) in {0, mask}

    # Dice sums (mask is idempotent; onehot_m is binary so no square needed).
    intersect = jnp.sum(x * onehot_m, axis=1, keepdims=True)   # Σ score·target
    y_sum = jnp.sum(onehot_m, axis=1, keepdims=True)            # Σ target²
    z_sum = jnp.sum(x * x * mask, axis=1, keepdims=True)        # Σ score²

    out_ref[...] += jnp.concatenate([intersect, y_sum, z_sum], axis=1)


def _pick_tile_n(s_total, n_classes, itemsize, requested):
    """Lane-tile size: big (hide per-step overhead) but VMEM-safe everywhere."""
    if requested >= s_total:
        return s_total                      # single full-row tile (always legal)
    tn = min(max(128, (requested // 128) * 128), s_total)
    # Keep the double-buffered score tile under ~8 MiB so the default scoped
    # VMEM limits (16 MiB on v5e, 32 MiB on v6e/v7x) are never hit.
    while tn > 256 and 2 * n_classes * tn * itemsize > (8 << 20):
        tn = max(128, ((tn // 2) // 128) * 128)
    return tn


def dice_loss(inputs, target, n_classes, weight=None, softmax=False,
              ignore=None, tile_n=4096):
    """Pallas TPU implementation of DiceLoss.forward.

    inputs: [B, C, H, W] class scores (any float dtype; streamed as-is)
    target: [B, H, W] class labels (int, or integer-valued float)
    ignore: optional [B, H, W]; positions equal to -1 are excluded
    """
    B, C, H, W = inputs.shape
    assert C == n_classes, "predict & target shape do not match"
    S = H * W

    # Free, contiguous reshapes only -- no extra HBM passes before the kernel.
    x = inputs.reshape(B, C, S)
    t = target.reshape(B, 1, S)

    tn = _pick_tile_n(S, C, x.dtype.itemsize, tile_n)
    grid = (B, pl.cdiv(S, tn))

    in_specs = [
        pl.BlockSpec((pl.Squeezed(), C, tn), lambda b, j: (b, 0, j)),
        pl.BlockSpec((pl.Squeezed(), 1, tn), lambda b, j: (b, 0, j)),
    ]
    args = [x, t]
    if ignore is not None:
        args.append(ignore.reshape(B, 1, S))
        in_specs.append(
            pl.BlockSpec((pl.Squeezed(), 1, tn), lambda b, j: (b, 0, j)))

    kernel = functools.partial(
        _dice_sums_kernel, n_classes=C, apply_softmax=softmax,
        has_ignore=ignore is not None, s_total=S, tile_n=tn)

    sums = pl.pallas_call(
        kernel,
        out_shape=jax.ShapeDtypeStruct((B, C, 3), jnp.float32),
        grid_spec=pltpu.PrefetchScalarGridSpec(
            num_scalar_prefetch=0,
            grid=grid,
            in_specs=in_specs,
            out_specs=pl.BlockSpec((pl.Squeezed(), C, 3), lambda b, j: (b, 0, 0)),
        ),
        compiler_params=pltpu.CompilerParams(
            dimension_semantics=("parallel", "arbitrary")),
    )(*args)

    # Reduce the per-batch partials (tiny) and finish the dice formula on host.
    sums = jnp.sum(sums, axis=0)                       # (C, 3)
    smooth = 1e-5
    intersect, y_sum, z_sum = sums[:, 0], sums[:, 1], sums[:, 2]
    per_class = 1.0 - (2.0 * intersect + smooth) / (z_sum + y_sum + smooth)

    if weight is None:
        weight = [1.0] * C
    weight = jnp.asarray(weight, jnp.float32)
    return jnp.sum(per_class * weight) / C


def _dice_loss_ref(inputs, target, n_classes, weight=None, softmax=False,
                   ignore=None):
    """Pure-JAX reference mirroring the PyTorch module."""
    x = jax.nn.softmax(inputs, axis=1) if softmax else inputs
    onehot = jax.nn.one_hot(target.astype(jnp.int32), n_classes, axis=1,
                            dtype=jnp.float32)
    if ignore is None:
        m = jnp.ones(target.shape, jnp.float32)
    else:
        m = (ignore != -1).astype(jnp.float32)
    if weight is None:
        weight = [1.0] * n_classes
    smooth = 1e-5
    loss = 0.0
    for i in range(n_classes):
        s = x[:, i] * m
        tg = onehot[:, i] * m
        inter = jnp.sum(s * tg)
        ysum = jnp.sum(tg * tg)
        zsum = jnp.sum(s * s)
        loss += (1.0 - (2.0 * inter + smooth) / (zsum + ysum + smooth)) * weight[i]
    return loss / n_classes


if __name__ == "__main__":
    B, C, H, W = 2, 4, 16, 16
    key = jax.random.PRNGKey(0)
    k1, k2, k3 = jax.random.split(key, 3)

    inputs = jax.random.normal(k1, (B, C, H, W), dtype=jnp.float32)
    target = jax.random.randint(k2, (B, H, W), 0, C).astype(jnp.int32)

    # softmax=True path (class softmax computed inside the kernel)
    loss = jax.block_until_ready(
        dice_loss(inputs, target, n_classes=C, softmax=True))
    ref = _dice_loss_ref(inputs, target, C, softmax=True)
    assert jnp.allclose(loss, ref, atol=1e-5, rtol=1e-5), (loss, ref)

    # default path (softmax=False, ignore=None -> no mask stream at all)
    loss2 = jax.block_until_ready(dice_loss(inputs, target, n_classes=C))
    ref2 = _dice_loss_ref(inputs, target, C)
    assert jnp.allclose(loss2, ref2, atol=1e-5, rtol=1e-5), (loss2, ref2)

    # ignore mask + class weights + ragged lane tail (S=320 with tile_n=128)
    H2, W2 = 16, 20
    k4, k5, k6 = jax.random.split(k3, 3)
    inputs3 = jax.random.normal(k4, (B, C, H2, W2), dtype=jnp.float32)
    target3 = jax.random.randint(k5, (B, H2, W2), 0, C).astype(jnp.float32)
    ignore3 = jnp.where(jax.random.uniform(k6, (B, H2, W2)) < 0.25, -1.0, 0.0)
    wts = [0.5, 1.0, 1.5, 2.0]
    loss3 = jax.block_until_ready(
        dice_loss(inputs3, target3, n_classes=C, weight=wts, softmax=True,
                  ignore=ignore3, tile_n=128))
    ref3 = _dice_loss_ref(inputs3, target3, C, weight=wts, softmax=True,
                          ignore=ignore3)
    assert jnp.allclose(loss3, ref3, atol=1e-5, rtol=1e-5), (loss3, ref3)

    print("KERNEL_OK")
</pallas_src>

<mosaic_0001>
module attributes {stable_mosaic.version = 11 : i64} {
  func.func @_dice_sums_kernel(%arg0: i32, %arg1: i32, %arg2: memref<1x4x256xf32, #tpu.memory_space<vmem>>, %arg3: memref<1x1x256xi32, #tpu.memory_space<vmem>>, %arg4: memref<1x4x3xf32, #tpu.memory_space<vmem>>) attributes {dimension_semantics = [#tpu.dimension_semantics<parallel>, #tpu.dimension_semantics<arbitrary>], iteration_bounds = array<i64: 2, 1>, scalar_prefetch = 0 : i64, scratch_operands = 0 : i64, tpu.core_type = #tpu.core_type<tc>, window_params = [{transform_indices = @transform_0, window_bounds = array<i64: 1, 4, 256>}, {transform_indices = @transform_1, window_bounds = array<i64: 1, 1, 256>}, {transform_indices = @transform_2, window_bounds = array<i64: 1, 4, 3>}]} {
    %c0_i32 = arith.constant 0 : i32
    %0 = arith.cmpi eq, %arg1, %c0_i32 : i32
    %1 = arith.extui %0 : i1 to i32
    %c0_i32_0 = arith.constant 0 : i32
    %2 = arith.cmpi ne, %1, %c0_i32_0 : i32
    scf.if %2 {
      %cst_19 = arith.constant 0.000000e+00 : f32
      %54 = vector.broadcast %cst_19 : f32 to vector<4x3xf32>
      %c0_20 = arith.constant 0 : index
      %c0_21 = arith.constant 0 : index
      %c0_22 = arith.constant 0 : index
      %55 = vector.load %arg4[%c0_20, %c0_21, %c0_22] : memref<1x4x3xf32, #tpu.memory_space<vmem>>, vector<1x4x3xf32>
      %56 = vector.shape_cast %55 : vector<1x4x3xf32> to vector<4x3xf32>
      %57 = vector.shape_cast %54 : vector<4x3xf32> to vector<1x4x3xf32>
      tpu.vector_store %arg4[%c0_20, %c0_21, %c0_22], %57 {strides = array<i32>} : memref<1x4x3xf32, #tpu.memory_space<vmem>>, vector<1x4x3xf32>,
    } else {
    }
    %c256_i32 = arith.constant 256 : i32
    %3 = arith.muli %arg1, %c256_i32 : i32
    %4 = tpu.iota {dimensions = array<i32: 1>} : vector<1x256xi32>
    %5 = vector.broadcast %3 : i32 to vector<1x256xi32>
    %6 = arith.addi %5, %4 : vector<1x256xi32>
    %c256_i32_1 = arith.constant 256 : i32
    %7 = vector.broadcast %c256_i32_1 : i32 to vector<1x256xi32>
    %8 = arith.cmpi slt, %6, %7 : vector<1x256xi32>
    %c0 = arith.constant 0 : index
    %c0_2 = arith.constant 0 : index
    %c0_3 = arith.constant 0 : index
    %9 = vector.load %arg2[%c0, %c0_2, %c0_3] : memref<1x4x256xf32, #tpu.memory_space<vmem>>, vector<1x4x256xf32>
    %10 = vector.shape_cast %9 : vector<1x4x256xf32> to vector<4x256xf32>
    %cst = arith.constant 0.000000e+00 : f32
    %11 = vector.shape_cast %8 : vector<1x256xi1> to vector<1x256xi1>
    %12 = vector.broadcast %11 : vector<1x256xi1> to vector<4x256xi1>
    %13 = vector.broadcast %cst : f32 to vector<4x256xf32>
    %14 = arith.select %12, %10, %13 : vector<4x256xi1>, vector<4x256xf32>
    %cst_4 = arith.constant dense<0xFF800000> : vector<256xf32>
    %15 = vector.multi_reduction <maximumf>, %14, %cst_4 [0] : vector<4x256xf32> to vector<256xf32>
    %16 = vector.shape_cast %15 : vector<256xf32> to vector<1x256xf32>
    %17 = vector.broadcast %16 : vector<1x256xf32> to vector<4x256xf32>
    %18 = arith.subf %14, %17 : vector<4x256xf32>
    %19 = math.exp %18 : vector<4x256xf32>
    %cst_5 = arith.constant dense<0.000000e+00> : vector<256xf32>
    %20 = vector.multi_reduction <add>, %19, %cst_5 [0] : vector<4x256xf32> to vector<256xf32>
    %21 = vector.shape_cast %20 : vector<256xf32> to vector<1x256xf32>
    %22 = tpu.reciprocal %21 : vector<1x256xf32> -> vector<1x256xf32>
    %23 = vector.broadcast %22 : vector<1x256xf32> to vector<4x256xf32>
    %24 = arith.mulf %19, %23 : vector<4x256xf32>
    %25 = arith.extui %8 : vector<1x256xi1> to vector<1x256xi32>
    %26 = arith.sitofp %25 : vector<1x256xi32> to vector<1x256xf32>
    %c0_6 = arith.constant 0 : index
    %c0_7 = arith.constant 0 : index
    %c0_8 = arith.constant 0 : index
    %27 = vector.load %arg3[%c0_6, %c0_7, %c0_8] : memref<1x1x256xi32, #tpu.memory_space<vmem>>, vector<1x1x256xi32>
    %28 = vector.shape_cast %27 : vector<1x1x256xi32> to vector<1x256xi32>
    %29 = tpu.iota {dimensions = array<i32: 0>} : vector<4x1xi32>
    %30 = vector.broadcast %28 : vector<1x256xi32> to vector<4x256xi32>
    %31 = vector.broadcast %29 : vector<4x1xi32> to vector<4x256xi32>
    %32 = arith.cmpi eq, %30, %31 : vector<4x256xi32>
    %cst_9 = arith.constant 0.000000e+00 : f32
    %33 = vector.shape_cast %26 : vector<1x256xf32> to vector<1x256xf32>
    %34 = vector.broadcast %33 : vector<1x256xf32> to vector<4x256xf32>
    %35 = vector.broadcast %cst_9 : f32 to vector<4x256xf32>
    %36 = arith.select %32, %34, %35 : vector<4x256xi1>, vector<4x256xf32>
    %37 = arith.mulf %24, %36 : vector<4x256xf32>
    %cst_10 = arith.constant dense<0.000000e+00> : vector<4xf32>
    %38 = vector.multi_reduction <add>, %37, %cst_10 [1] : vector<4x256xf32> to vector<4xf32>
    %39 = vector.shape_cast %38 : vector<4xf32> to vector<4x1xf32>
    %cst_11 = arith.constant dense<0.000000e+00> : vector<4xf32>
    %40 = vector.multi_reduction <add>, %36, %cst_11 [1] : vector<4x256xf32> to vector<4xf32>
    %41 = vector.shape_cast %40 : vector<4xf32> to vector<4x1xf32>
    %42 = arith.mulf %24, %24 : vector<4x256xf32>
    %43 = vector.broadcast %26 : vector<1x256xf32> to vector<4x256xf32>
    %44 = arith.mulf %42, %43 : vector<4x256xf32>
    %cst_12 = arith.constant dense<0.000000e+00> : vector<4xf32>
    %45 = vector.multi_reduction <add>, %44, %cst_12 [1] : vector<4x256xf32> to vector<4xf32>
    %46 = vector.shape_cast %45 : vector<4xf32> to vector<4x1xf32>
    %c0_13 = arith.constant 0 : index
    %c0_14 = arith.constant 0 : index
    %c0_15 = arith.constant 0 : index
    %47 = vector.load %arg4[%c0_13, %c0_14, %c0_15] : memref<1x4x3xf32, #tpu.memory_space<vmem>>, vector<1x4x3xf32>
    %48 = vector.shape_cast %47 : vector<1x4x3xf32> to vector<4x3xf32>
    %49 = tpu.concatenate %39, %41, %46 in 1 : vector<4x1xf32>, vector<4x1xf32>, vector<4x1xf32> -> vector<4x3xf32>
    %50 = arith.addf %48, %49 : vector<4x3xf32>
    %c0_16 = arith.constant 0 : index
    %c0_17 = arith.constant 0 : index
    %c0_18 = arith.constant 0 : index
    %51 = vector.load %arg4[%c0_16, %c0_17, %c0_18] : memref<1x4x3xf32, #tpu.memory_space<vmem>>, vector<1x4x3xf32>
    %52 = vector.shape_cast %51 : vector<1x4x3xf32> to vector<4x3xf32>
    %53 = vector.shape_cast %50 : vector<4x3xf32> to vector<1x4x3xf32>
    tpu.vector_store %arg4[%c0_16, %c0_17, %c0_18], %53 {strides = array<i32>} : memref<1x4x3xf32, #tpu.memory_space<vmem>>, vector<1x4x3xf32>,
    return
  }
  func.func @transform_0(%arg0: i32, %arg1: i32) -> (i32, i32, i32) {
    %c0_i32 = arith.constant 0 : i32
    %c0_i32_0 = arith.constant 0 : i32
    return %arg0, %c0_i32, %arg1 : i32, i32, i32
  }
  func.func @transform_1(%arg0: i32, %arg1: i32) -> (i32, i32, i32) {
    %c0_i32 = arith.constant 0 : i32
    %c0_i32_0 = arith.constant 0 : i32
    return %arg0, %c0_i32, %arg1 : i32, i32, i32
  }
  func.func @transform_2(%arg0: i32, %arg1: i32) -> (i32, i32, i32) {
    %c0_i32 = arith.constant 0 : i32
    %c0_i32_0 = arith.constant 0 : i32
    %c0_i32_1 = arith.constant 0 : i32
    return %arg0, %c0_i32, %c0_i32_0 : i32, i32, i32
  }
}

</mosaic_0001>

<bundles_post_ra>
// kernel: tpu_custom_call.1
= control target key start
LH: loop header
LB: loop body
LE: loop exit
PB: predicated region body
PF: predicated region fallthrough
CT: control target
= control target key end

     0   :  { %7 = vsyncpa [#allocation3], 0  ;;  %s840_s0 = inlined_call_operand.hbm [shape: f32[2,4,256], index: 0, kind: input, shape index: {}]   ;;  %s841_s1 = inlined_call_operand.hbm [shape: s32[2,1,256], index: 1, kind: input, shape index: {}]   ;;  %s842_s2 = inlined_call_operand.vmem [shape: f32[2,4,3], index: 2, kind: output, shape index: {}]  }
   0x1   :  { %9 = vsyncpa [#allocation3 + $0x1], 0 }
   0x2   :  { %10 = vsyncpa [#allocation5], 0 }
   0x3   :  { %12 = vsyncpa [#allocation5 + $0x1], 0  ;;  %s654_s9 = smov 0   ;;  %s656_s10 = smov 0  }
   0x4   :  { %s658_s11 = smov 0   ;;  %s660_s12 = smov 0  }
   0x5   :  { %s662_s13 = smov 0   ;;  %s664_s14 = smov 0  }
   0x6 LB: > { %s432_s15 = sadd.s32 4294967295, %s634_s14   ;;  %s30_s16 = sadd.s32 1, %s630_s13  ;;  %s634_s14 = sphi %s664_s14, %s18_s14   ;;  %s630_s13 = sphi %s662_s13, %s856_s13   ;;  %s626_s12 = sphi %s660_s12, %s855_s12   ;;  %s622_s11 = sphi %s658_s11, %s854_s11   ;;  %s618_s10 = sphi %s656_s10, %s853_s10   ;;  %s614_s9 = sphi %s654_s9, %s852_s9  }
   0x7   : > { %p32_p0 = scmp.ge.s32.totalorder %s30_s16, 2  ;;  %s39_s17 = sadd.s32 1, %s622_s11 }
   0x8   : > { %p46_p1 = scmp.ne.s32.totalorder %s622_s11, %s618_s10  ;;  %p47_p2 = scmp.eq.s32.totalorder %s634_s14, 0 }
   0x9   : > { %s858_s16 = smov (%p32_p0, %s30_s16), 0  ;;  %p52_p4 = scmp.ne.s32.totalorder %s618_s10, %s614_s9 }
   0xa   : > { %p690_p3 = por %p47_p2, %p46_p1  ;;  %s34_s19 = ssub.s32 %s630_s13, %s858_s16 }
   0xb   : > { %p53_p5 = scmp.eq.s32.totalorder %s432_s15, 0  ;;  %p37_p6 = scmp.eq.s32.totalorder %s34_s19, 0 }
   0xc   : > { %p461_p8 = scmp.lt.s32.totalorder %s634_s14, 2  ;;  %s706_s22 = sand.u32 1, %s622_s11  }
   0xd   : > { %p697_p7 = por %p53_p5, %p52_p4  ;;  %s448_s23 = sshll.u32 %s630_s13, 7 }
   0xe   : > { %s703_s21 = scalar_select %p37_p6, %s622_s11, %s39_s17  }
   0xf   : > { %s845_s20 = scalar_select %p697_p7, 1, 0 }
  0x10   : > { %s436_s24 = sshll.u32 %s706_s22, 3  ;;  %s713_s27 = scalar_lea.hbm %s840_s0, %s448_s23 }
  0x11   : > { %s134_s28 = scalar_lea.vmem [#allocation2], %s436_s24  ;;  %p717_p9 = pnand %p461_p8, %p690_p3 }
  0x12   : > { %s144_s29 = sshll.u32 %s134_s28, 4  ;;  %s131_s3 = scalar_lea.sflag [#allocation3], %s706_s22  ;;  %s721_s29 = int_to_ptr.vmem [resolvable:$true] %s144_s29 }
  0x13   : > { %s520_s4 = scalar_lea.hbm %s713_s27, 128  ;;  %p522_p13 = pneg %p717_p9 }
  0x14   : > { %p521_p12 = scmp.ne.s32.totalorder %s713_s27, %s520_s4  ;;  %s525_s7 = scalar_lea.hbm %s840_s0, 256 }
  0x15   : > { %p526_p2 = scmp.lt.u32.totalorder %s713_s27, %s840_s0  ;;  %p527_p3 = scmp.lt.u32.totalorder %s525_s7, %s520_s4 }
  0x16   : > { %p523_p0 = pnand %p522_p13, %p521_p12  ;;  %p529_p5 = scmp.lt.u32.totalorder %s520_s4, %s713_s27 }
  0x17   : > { %p528_p4 = por %p527_p3, %p526_p2 }
  0x18   : > { %p524_p1 = pneg %p523_p0 }
  0x19   : > { %p530_p6 = por %p529_p5, %p528_p4 }
  0x1b   : > { %p531_p8 = pnand %p530_p6, %p524_p1 }
  0x1d   : > { %534 = shalt.err (!%p531_p8)
}
  0x1e   : > { %s535_s15 = scalar_lea.vmem %s721_s29, 128  ;;  %s636_s17 = smov [#allocation2]  }
  0x1f   : > { %p536_p12 = scmp.ne.s32.totalorder %s721_s29, %s535_s15  ;;  %s540_s18 = sshll.u32 %s636_s17, 4  ;;  %s541_s18 = int_to_ptr.vmem [resolvable:$false] %s540_s18 }
  0x20   : > { %s542_s19 = scalar_lea.vmem %s541_s18, 256  ;;  %p543_p11 = scmp.lt.s32.totalorder %s721_s29, %s541_s18 }
  0x21   : > { %p538_p0 = pnand %p536_p12, %p522_p13  ;;  %p544_p2 = scmp.lt.s32.totalorder %s542_s19, %s535_s15 }
  0x23   : > { %p539_p10 = pneg %p538_p0  ;;  %p545_p3 = por %p544_p2, %p543_p11 }
  0x25   : > { %p546_p4 = pnand %p545_p3, %p539_p10 }
  0x27   : > { %549 = shalt.err (!%p546_p4)
}
  0x28   : > { %457 = dma.hbm_to_vmem [thread:$0]  (!%p717_p9), %s713_s27, 128, %s721_s29, %s131_s3  }
  0x29   : > { %p847_p1 = scmp.lt.s32.totalorder %s634_s14, 3  ;;  %p848_p5 = scmp.ge.s32.totalorder %s634_s14, 1 }
  0x2a   : > { %s439_s24 = sshll.u32 %s706_s22, 1  ;;  %s449_s25 = sshll.u32 %s630_s13, 5 }
  0x2b   : > { %p755_p6 = pnand %p848_p5, %p847_p1  ;;  %s764_s4 = scalar_lea.hbm %s841_s1, %s449_s25 }
  0x2c   : > { %s155_s5 = scalar_lea.vmem [#allocation4], %s439_s24  ;;  %s152_s27 = scalar_lea.sflag [#allocation5], %s706_s22 }
  0x2d   : > { %s849_s23 = scalar_select %p755_p6, 1, 0 }
  0x2e   : > { %s165_s6 = sshll.u32 %s155_s5, 4  ;;  %s550_s29 = scalar_lea.hbm %s764_s4, 32  ;;  %s166_s6 = int_to_ptr.vmem [resolvable:$true] %s165_s6 }
  0x2f   : > { %p551_p10 = scmp.ne.s32.totalorder %s764_s4, %s550_s29  ;;  %s555_s8 = scalar_lea.hbm %s841_s1, 64 }
  0x30   : > { %p556_p12 = scmp.lt.u32.totalorder %s764_s4, %s841_s1  ;;  %p557_p0 = scmp.lt.u32.totalorder %s555_s8, %s550_s29 }
  0x31   : > { %p553_p11 = pnand %p551_p10, %p522_p13  ;;  %p559_p3 = scmp.lt.u32.totalorder %s550_s29, %s764_s4 }
  0x32   : > { %p558_p2 = por %p557_p0, %p556_p12 }
  0x33   : > { %p554_p8 = pneg %p553_p11 }
  0x34   : > { %p560_p4 = por %p559_p3, %p558_p2 }
  0x36   : > { %p561_p1 = pnand %p560_p4, %p554_p8 }
  0x38   : > { %564 = shalt.err (!%p561_p1)
}
  0x39   : > { %s565_s22 = scalar_lea.vmem %s166_s6, 32  ;;  %s637_s17 = smov [#allocation4]  }
  0x3a   : > { %p566_p5 = scmp.ne.s32.totalorder %s166_s6, %s565_s22  ;;  %s570_s18 = sshll.u32 %s637_s17, 4  ;;  %s571_s18 = int_to_ptr.vmem [resolvable:$false] %s570_s18 }
  0x3b   : > { %s572_s19 = scalar_lea.vmem %s571_s18, 64  ;;  %p573_p7 = scmp.lt.s32.totalorder %s166_s6, %s571_s18 }
  0x3c   : > { %p568_p10 = pnand %p566_p5, %p522_p13  ;;  %p574_p6 = scmp.lt.s32.totalorder %s572_s19, %s565_s22 }
  0x3e   : > { %p569_p11 = pneg %p568_p10  ;;  %p575_p0 = por %p574_p6, %p573_p7 }
  0x40   : > { %p576_p12 = pnand %p575_p0, %p569_p11 }
  0x42   : > { %579 = shalt.err (!%p576_p12)
}
  0x43   : > { %460 = dma.hbm_to_vmem [thread:$0]  (!%p717_p9), %s764_s4, 32, %s166_s6, %s152_s27  }
  0x44   : > { %p850_p8 = scmp.ne.s32.totalorder %s849_s23, 0 }
  0x45   : > { %s176_s24 = sand.u32 (!%p850_p8), 1, %s618_s10   ;;  %p851_p13 = scmp.ne.s32.totalorder (!%p850_p8), %s845_s20, 0 }
  0x46   : > { %174 = sbr.rel (%p850_p8) target bundleno = 294 (0x126), region = 28  ;;  %s443_s25 = sshll.u32 (!%p850_p8), %s176_s24, 3 }
  0x47   : > { %s177_s26 = scalar_lea.sflag (!%p850_p8), [#allocation3], %s176_s24  ;;  %s180_s28 = scalar_lea.vmem (!%p850_p8), [#allocation2], %s443_s25 }
  0x4d   : > { %605 = dma.done.wait (%p851_p13), %s177_s26, 128  }
  0x4e   : > { %607 = vsyncadd (%p851_p13), %s177_s26, 4294967168  ;;  %s444_s5 = sshll.u32 %s176_s24, 1  ;;  %s186_s29 = scalar_lea.sflag [#allocation5], %s176_s24 }
  0x4f   : > { %s793_s30 = scalar_lea.vmem [#allocation4], %s444_s5 }
  0x50   : > { %609 = dma.done.wait (%p851_p13), %s186_s29, 32  }
  0x51   : > { %611 = vsyncadd (%p851_p13), %s186_s29, 4294967264  ;;  %p216_p7 = scmp.lt.s32.totalorder %s626_s12, 1  ;;  %vm224_vm0 = vcmask 19456   ;;  %vm245_vm1 = vcmask 1043456   ;;  %v638_v0 = vmov 0.0   ;;  %v235_v1 = vld [vmem:[%s180_s28] sm:$0xff]  ;;  %v287_v28 = vlaneseq }
  0x52   : > { %v241_v2 = vcombine.high %v235_v1, %v235_v1  ;;  %v246_v3 = vsel %vm245_vm1, %v235_v1, -inf  ;;  %v286_v40 = vld [vmem:[%s793_s30] sm:$0x3]  ;;  %vm323_vm4 = vcmask 7168   ;;  %vm325_vm5 = vcmask 15360  }
  0x53   : > { %s860_s12 = smov (!%p216_p7, %s626_s12), 1  ;;  %v247_v4 = vrot.slane %v246_v3, 4  ;;  %v288_v33 = vshrl.u32 %v287_v28, 7 }
  0x54   : > { %s445_s23 = sshll.u32 %s860_s12, 2  ;;  %v253_v5 = vsel %vm245_vm1, %v241_v2, -inf }
  0x55   : > { %s804_s27 = scalar_lea.vmem %s842_s2, %s445_s23  ;;  %v248_v6 = vmax.f32 %v246_v3, %v247_v4  ;;  %v254_v7 = vrot.slane %v253_v5, 4  ;;  %v291_v38 = vsub.s32 0, %v288_v33  ;;  %v295_v41 = vsub.s32 1, %v288_v33 }
  0x56   : > { %225 = vst.msk [vmem:[%s804_s27] sm:$0xf] %vm224_vm0, %v638_v0 }
  0x57   : > { %v249_v8 = vrot.slane %v248_v6, 2  ;;  %v255_v9 = vmax.f32 %v253_v5, %v254_v7  ;;  %v292_v42 = vrot.slane %v286_v40, %v291_v38  ;;  %v296_v43 = vrot.slane %v286_v40, %v295_v41 }
  0x59   : > { %v250_v10 = vmax.f32 %v248_v6, %v249_v8  ;;  %v256_v11 = vrot.slane %v255_v9, 2  ;;  %vm297_vm2 = vcmp.eq.s32.totalorder %v292_v42, %v288_v33  ;;  %vm298_vm3 = vcmp.eq.s32.totalorder %v296_v43, %v288_v33 }
  0x5a   : > { %v299_v45 = vsel %vm297_vm2, 1.0, %v638_v0  ;;  %v300_v48 = vsel %vm298_vm3, 1.0, %v638_v0 }
  0x5b   : > { %v251_v12 = vrot.slane %v250_v10, 1  ;;  %v257_v13 = vmax.f32 %v255_v9, %v256_v11  ;;  %v308_v57 = vsel %vm245_vm1, %v299_v45, 0.0  ;;  %v309_v58 = vsel %vm245_vm1, %v300_v48, 0.0 }
  0x5c   : > { %v310_v62 = vadd.f32 %v309_v58, %v308_v57 }
  0x5d   : > { %v252_v14 = vmax.f32 %v250_v10, %v251_v12  ;;  %v258_v15 = vrot.slane %v257_v13, 1 }
  0x5f   : > { %v259_v16 = vmax.f32 %v257_v13, %v258_v15  ;;  %v260_v17 = vsub.f32 %v235_v1, %v252_v14 }
  0x61   : > { %v261_v18 = vsub.f32 %v241_v2, %v259_v16  ;;  %v262_v19 = vmul.f32 1.442695, %v260_v17  ;;  %v322_v2 = vld [vmem:[%s804_s27] sm:$0xf] }
  0x63   : > { %512 = vpow2.f32 %v262_v19  ;;  %v264_v20 = vmul.f32 1.442695, %v261_v18 }
  0x65   : > { %514 = vpow2.f32 %v264_v20 }
  0x6d   : > { %v513_v21 = vpop.eup %512 }
  0x6e   : > { %v266_v22 = vsel %vm245_vm1, %v513_v21, 0.0 }
  0x6f   : > { %v515_v23 = vpop.eup %514  ;;  %v267_v24 = vrot.slane %v266_v22, 4 }
  0x70   : > { %v273_v25 = vsel %vm245_vm1, %v515_v23, 0.0 }
  0x71   : > { %v268_v26 = vadd.f32 %v267_v24, %v266_v22  ;;  %v274_v27 = vrot.slane %v273_v25, 4 }
  0x73   : > { %v269_v29 = vrot.slane %v268_v26, 2  ;;  %v275_v30 = vadd.f32 %v274_v27, %v273_v25 }
  0x75   : > { %v270_v31 = vadd.f32 %v269_v29, %v268_v26  ;;  %v276_v32 = vrot.slane %v275_v30, 2 }
  0x77   : > { %v271_v34 = vrot.slane %v270_v31, 1  ;;  %v277_v35 = vadd.f32 %v276_v32, %v275_v30 }
  0x79   : > { %v272_v36 = vadd.f32 %v271_v34, %v270_v31  ;;  %v278_v37 = vrot.slane %v277_v35, 1 }
  0x7b   : > { %v279_v39 = vadd.f32 %v278_v37, %v277_v35  ;;  %516 = vrcp.f32 %v272_v36 }
  0x7d   : > { %518 = vrcp.f32 %v279_v39 }
  0x85   : > { %v517_v44 = vpop.eup %516 }
  0x86   : > { %v282_v46 = vmul.f32 %v517_v44, %v513_v21 }
  0x87   : > { %v519_v47 = vpop.eup %518 }
  0x88   : > { %v283_v49 = vmul.f32 %v519_v47, %v515_v23  ;;  %v301_v50 = vmul.f32 %v299_v45, %v282_v46  ;;  %v313_v51 = vmul.f32 %v282_v46, %v282_v46 }
  0x8a   : > { %v302_v52 = vmul.f32 %v300_v48, %v283_v49  ;;  %v303_v53 = vsel %vm245_vm1, %v301_v50, 0.0  ;;  %v314_v54 = vmul.f32 %v283_v49, %v283_v49  ;;  %v317_v55 = vsel %vm245_vm1, %v313_v51, 0.0 }
  0x8c   : > { %v304_v56 = vsel %vm245_vm1, %v302_v52, 0.0  ;;  %v318_v59 = vsel %vm245_vm1, %v314_v54, 0.0 }
  0x8d   : > { %v305_v60 = vadd.f32 %v304_v56, %v303_v53  ;;  %v319_v61 = vadd.f32 %v318_v59, %v317_v55 }
  0x8f   : > { %306 = vadd.xlane.f32.xlu0 %v305_v60  ;;  %320 = vadd.xlane.f32.xlu1 %v319_v61 }
  0x93   : > { %311 = vadd.xlane.f32.xlu0 %v310_v62 }
 0x11c   : > { %v307_v63 = vpop.xlane.xlu0 %306  ;;  %v321_v0 = vpop.xlane.xlu1 %320 }
 0x120   : > { %v312_v1 = vpop.xlane.xlu0 %311 }
 0x121   : > { %v324_v3 = vsel %vm323_vm4, %v307_v63, %v312_v1 }
 0x122   : > { %v326_v4 = vsel %vm325_vm5, %v324_v3, %v321_v0 }
 0x123   : > { %v327_v5 = vadd.f32 %v326_v4, %v322_v2 }
 0x125   : > { %329 = vst.msk [vmem:[%s804_s27] sm:$0xf] %vm224_vm0, %v327_v5 }
 0x126 PF: > { %s18_s14 = sadd.s32 1, %s634_s14   ;;  %s852_s9 = smov %s618_s10 }
 0x127   : > { %p15_p9 = scmp.ge.s32.totalorder %s18_s14, 4   ;;  %s853_s10 = smov %s622_s11 }
 0x128   : > { %s854_s11 = smov %s703_s21  ;;  %s855_s12 = smov %s630_s13 }
 0x129   : > { %s856_s13 = smov %s858_s16  ;;  %17 = sbr.rel (!%p15_p9) target bundleno = 6 (0x6), region = 85 }
 0x130   :  { %349 = vsyncpa [#allocation3], 1 }
 0x131   :  { %351 = vsyncpa [#allocation3 + $0x1], 1 }
 0x132   :  { %352 = vsyncpa [#allocation5], 1 }
 0x133   :  { %354 = vsyncpa [#allocation5 + $0x1], 1 }

</bundles_post_ra>
